<compile_context>
chip_gen: v5e
topology: v5e:2x2
jax: 0.10.0
libtpu: 0.0.40
codegen_flags: <defaults>
</compile_context>

<pallas_src>
import jax
import jax.numpy as jnp
from jax import lax
from jax.experimental import pallas as pl
from jax.experimental.pallas import tpu as pltpu


# ---------------- Pallas kernel ----------------

def _conv1x1_bn_silu_kernel(x_ref, w_ref, bias_ref, o_ref):
    # x: (bm, C1p) bf16, w: (C1p, C2p) bf16 (BN scale pre-folded),
    # bias: (1, C2p) f32, o: (bm, C2p) f32.
    # 1x1 conv == one MXU matmul over channels per spatial tile, fused with
    # the folded-BN bias and SiLU.
    y = jnp.dot(x_ref[...], w_ref[...], preferred_element_type=jnp.float32)
    y = y + bias_ref[...]
    # SiLU: exp + reciprocal both go to the EUP slot (VALU stays free).
    o_ref[...] = y * pl.reciprocal(1.0 + jnp.exp(-y), approx=True)


# ---------------- wrapper / glue ----------------

def _round_up(x, m):
    return (x + m - 1) // m * m


def fold_bn(gamma, beta, mean, var, eps=1e-5):
    scale = gamma / jnp.sqrt(var + eps)
    bias = beta - mean * scale
    return scale, bias


def _pick_block_m(M, c1p, c2p, block_m, vmem_budget=20 * 1024 * 1024):
    """Largest spatial tile (multiple of 8) whose double-buffered working set
    fits the VMEM budget alongside the resident weight tile."""
    per_row = 2 * (c1p * 2 + c2p * 4)          # 2 bufs x (bf16 in + f32 out)
    resident = c1p * c2p * 2 + 2 * c2p * 4     # weight (bf16) + bias (f32, 2 bufs)
    avail = max(vmem_budget - resident, per_row * 8)
    bm = min(block_m, avail // per_row, max(M, 8))
    bm = max(8, (bm // 8) * 8)
    return bm


def conv1_forward_nhwc(x_nhwc, params, *, block_m=1024):
    """Fused 1x1 conv + BN(eval) + SiLU on an NHWC activation tensor."""
    N, H, W, c1 = x_nhwc.shape
    c2 = params["w"].shape[0]

    # Lane-dense channel padding (multiple of 128).
    c1p = _round_up(c1, 128)
    c2p = _round_up(c2, 128)

    M = N * H * W
    bm = _pick_block_m(M, c1p, c2p, block_m)
    Mp = _round_up(M, bm)                       # full tiles only -> no partial blocks

    # Activations: flatten spatial, pad rows/channels, cast to bf16 for the MXU.
    x2d = x_nhwc.reshape(M, c1).astype(jnp.bfloat16)
    if (Mp != M) or (c1p != c1):
        x2d = jnp.pad(x2d, ((0, Mp - M), (0, c1p - c1)))

    # Folded BN (eval mode): scale goes into the weight, bias stays in-kernel.
    scale, bias = fold_bn(**params["bn"])

    # 1x1 conv weight OIHW -> (c1, c2), fold BN scale (f32), channel-pad, bf16.
    w = jnp.transpose(params["w"][:, :, 0, 0], (1, 0)).astype(jnp.float32)
    w = (w * scale[None, :]).astype(jnp.bfloat16)
    if (c1p != c1) or (c2p != c2):
        w = jnp.pad(w, ((0, c1p - c1), (0, c2p - c2)))

    bias = jnp.pad(bias.astype(jnp.float32), (0, c2p - c2)).reshape(1, c2p)

    grid = (Mp // bm,)

    out = pl.pallas_call(
        _conv1x1_bn_silu_kernel,
        out_shape=jax.ShapeDtypeStruct((Mp, c2p), jnp.float32),
        grid=grid,
        in_specs=[
            pl.BlockSpec((bm, c1p), lambda i: (i, 0)),    # activation tile (pipelined)
            pl.BlockSpec((c1p, c2p), lambda i: (0, 0)),   # weights (resident, fetched once)
            pl.BlockSpec((1, c2p), lambda i: (0, 0)),     # folded BN bias
        ],
        out_specs=pl.BlockSpec((bm, c2p), lambda i: (i, 0)),
        compiler_params=pltpu.CompilerParams(
            dimension_semantics=("parallel",),            # shard spatial tiles across TCs
            vmem_limit_bytes=32 * 1024 * 1024,            # safe on v5e/v6e and v7x
        ),
    )(x2d, w, bias)

    return out[:M, :c2].reshape(N, H, W, c2)


def conv1_forward(x_nchw, params, *, block_m=1024):
    # PyTorch-layout boundary only.  When stacking blocks, stay in NHWC via
    # conv1_forward_nhwc to avoid paying these transposes per layer.
    x_nhwc = jnp.transpose(x_nchw, (0, 2, 3, 1))
    y = conv1_forward_nhwc(x_nhwc, params, block_m=block_m)
    return jnp.transpose(y, (0, 3, 1, 2))


def init_conv1_params(key, c1, c2):
    ks = jax.random.split(key, 5)
    return {
        # PyTorch conv weight layout (OIHW), no bias (bias=False in the module).
        "w": jax.random.normal(ks[0], (c2, c1, 1, 1), jnp.float32) * 0.1,
        "bn": dict(
            gamma=jax.random.uniform(ks[1], (c2,), minval=0.5, maxval=1.5),
            beta=jax.random.normal(ks[2], (c2,)) * 0.1,
            mean=jax.random.normal(ks[3], (c2,)) * 0.1,
            var=jax.random.uniform(ks[4], (c2,), minval=0.5, maxval=1.5),
        ),
    }


def conv1_reference(x_nchw, params):
    # Plain-JAX f32 reference (NCHW) for correctness checking only.
    y = lax.conv_general_dilated(
        x_nchw, params["w"], window_strides=(1, 1), padding=[(0, 0), (0, 0)],
        dimension_numbers=("NCHW", "OIHW", "NCHW"))
    s, b = fold_bn(**params["bn"])
    y = y * s[None, :, None, None] + b[None, :, None, None]
    return y * jax.nn.sigmoid(y)


if __name__ == "__main__":
    key = jax.random.PRNGKey(0)
    kx, kp = jax.random.split(key)

    N, C1, C2, H, W = 2, 4, 8, 16, 16           # M = N*H*W = 512
    x = jax.random.normal(kx, (N, C1, H, W), jnp.float32)
    params = init_conv1_params(kp, C1, C2)

    # block_m=128 -> grid of 4 parallel spatial tiles (exercises the pipeline
    # and the parallel dimension semantics even at this toy size).
    out = conv1_forward(x, params, block_m=128)
    out = jax.block_until_ready(out)

    ref = conv1_reference(x, params)
    assert out.shape == ref.shape == (N, C2, H, W)
    max_err = float(jnp.max(jnp.abs(out - ref)))
    # bf16 matmul inputs + approx reciprocal => small drift vs the f32 reference.
    assert jnp.allclose(out, ref, atol=2e-2, rtol=2e-2), max_err

    print("KERNEL_OK")
</pallas_src>

<mosaic_0001>
module attributes {stable_mosaic.version = 11 : i64} {
  func.func @_conv1x1_bn_silu_kernel(%arg0: i32, %arg1: memref<128x128xbf16, #tpu.memory_space<vmem>>, %arg2: memref<128x128xbf16, #tpu.memory_space<vmem>>, %arg3: memref<1x128xf32, #tpu.memory_space<vmem>>, %arg4: memref<128x128xf32, #tpu.memory_space<vmem>>) attributes {dimension_semantics = [#tpu.dimension_semantics<parallel>], iteration_bounds = array<i64: 4>, scalar_prefetch = 0 : i64, scratch_operands = 0 : i64, tpu.core_type = #tpu.core_type<tc>, window_params = [{transform_indices = @transform_0, window_bounds = array<i64: 128, 128>}, {pipeline_mode = #tpu.pipeline_mode<synchronous>, transform_indices = @transform_1, window_bounds = array<i64: 128, 128>}, {pipeline_mode = #tpu.pipeline_mode<synchronous>, transform_indices = @transform_2, window_bounds = array<i64: 1, 128>}, {transform_indices = @transform_3, window_bounds = array<i64: 128, 128>}]} {
    %c0 = arith.constant 0 : index
    %c0_0 = arith.constant 0 : index
    %0 = vector.load %arg1[%c0, %c0_0] : memref<128x128xbf16, #tpu.memory_space<vmem>>, vector<128x128xbf16>
    %c0_1 = arith.constant 0 : index
    %c0_2 = arith.constant 0 : index
    %1 = vector.load %arg2[%c0_1, %c0_2] : memref<128x128xbf16, #tpu.memory_space<vmem>>, vector<128x128xbf16>
    %cst = arith.constant dense<0.000000e+00> : vector<128x128xf32>
    %2 = tpu.matmul %0, %1, %cst {dimension_numbers = #tpu.dot_dimension_numbers<[1], [0], [0], [1], [0, 0, 1, 1], [], []>} : vector<128x128xbf16>, vector<128x128xbf16>, vector<128x128xf32> -> vector<128x128xf32>
    %c0_3 = arith.constant 0 : index
    %c0_4 = arith.constant 0 : index
    %3 = vector.load %arg3[%c0_3, %c0_4] : memref<1x128xf32, #tpu.memory_space<vmem>>, vector<1x128xf32>
    %4 = vector.broadcast %3 : vector<1x128xf32> to vector<128x128xf32>
    %5 = arith.addf %2, %4 : vector<128x128xf32>
    %cst_5 = arith.constant 0.000000e+00 : f32
    %6 = vector.broadcast %cst_5 : f32 to vector<128x128xf32>
    %7 = arith.subf %6, %5 : vector<128x128xf32>
    %8 = math.exp %7 : vector<128x128xf32>
    %cst_6 = arith.constant 1.000000e+00 : f32
    %9 = vector.broadcast %cst_6 : f32 to vector<128x128xf32>
    %10 = arith.addf %9, %8 : vector<128x128xf32>
    %11 = tpu.reciprocal %10 {approx = true} : vector<128x128xf32> -> vector<128x128xf32>
    %12 = arith.mulf %5, %11 : vector<128x128xf32>
    %c0_7 = arith.constant 0 : index
    %c0_8 = arith.constant 0 : index
    %13 = vector.load %arg4[%c0_7, %c0_8] : memref<128x128xf32, #tpu.memory_space<vmem>>, vector<128x128xf32>
    tpu.vector_store %arg4[%c0_7, %c0_8], %12 {strides = array<i32>} : memref<128x128xf32, #tpu.memory_space<vmem>>, vector<128x128xf32>,
    return
  }
  func.func @transform_0(%arg0: i32) -> (i32, i32) {
    %c0_i32 = arith.constant 0 : i32
    %c0_i32_0 = arith.constant 0 : i32
    return %arg0, %c0_i32 : i32, i32
  }
  func.func @transform_1(%arg0: i32) -> (i32, i32) {
    %c0_i32 = arith.constant 0 : i32
    %c0_i32_0 = arith.constant 0 : i32
    %c0_i32_1 = arith.constant 0 : i32
    return %c0_i32, %c0_i32_0 : i32, i32
  }
  func.func @transform_2(%arg0: i32) -> (i32, i32) {
    %c0_i32 = arith.constant 0 : i32
    %c0_i32_0 = arith.constant 0 : i32
    %c0_i32_1 = arith.constant 0 : i32
    return %c0_i32, %c0_i32_0 : i32, i32
  }
  func.func @transform_3(%arg0: i32) -> (i32, i32) {
    %c0_i32 = arith.constant 0 : i32
    %c0_i32_0 = arith.constant 0 : i32
    return %arg0, %c0_i32 : i32, i32
  }
}

</mosaic_0001>

<bundles_post_ra>
// kernel: tpu_custom_call.1
= control target key start
LH: loop header
LB: loop body
LE: loop exit
PB: predicated region body
PF: predicated region fallthrough
CT: control target
= control target key end

     0   :  { %8 = vsyncpa [#allocation3], 0  ;;  %s1256_s0 = inlined_call_operand.hbm [shape: bf16[512,128], index: 0, kind: input, shape index: {}]   ;;  %s1257_s1 = inlined_call_operand.hbm [shape: bf16[128,128], index: 1, kind: input, shape index: {}]   ;;  %s1258_s2 = inlined_call_operand.vmem [shape: f32[1,128], index: 2, kind: input, shape index: {}]   ;;  %s1259_s3 = inlined_call_operand.hbm [shape: f32[512,128], index: 3, kind: output, shape index: {}]  }
   0x1   :  { %10 = vsyncpa [#allocation3 + $0x1], 0 }
   0x2   :  { %11 = vsyncpa [#allocation6], 0 }
   0x3   :  { %12 = vsyncpa [#allocation4], 0 }
   0x4   :  { %14 = vsyncpa [#allocation4 + $0x1], 0  ;;  %s1007_s12 = smov 0   ;;  %s1009_s13 = smov 0  }
   0x5   :  { %s1011_s14 = smov 0   ;;  %s1013_s15 = smov 0  }
   0x6 LB: > { %s1028_s16 = sadd.s32 4294967295, %s980_s15   ;;  %s602_s17 = sadd.s32 4294967294, %s980_s15   ;;  %s980_s15 = sphi %s1013_s15, %s1268_s15   ;;  %s976_s14 = sphi %s1011_s14, %s1267_s14   ;;  %s972_s13 = sphi %s1009_s13, %s1266_s13   ;;  %s968_s12 = sphi %s1007_s12, %s1265_s12  }
   0x7   : > { %p40_p0 = scmp.ne.s32.totalorder %s972_s13, %s968_s12  ;;  %p41_p1 = scmp.eq.s32.totalorder %s1028_s16, 0 }
   0x8   : > { %p106_p2 = scmp.eq.s32.totalorder %s1028_s16, 3  ;;  %p112_p3 = scmp.eq.s32.totalorder %s602_s17, 3 }
   0x9   : > { %p1037_p4 = por %p41_p1, %p40_p0  ;;  %p603_p5 = scmp.ge.s32.totalorder %s980_s15, 1 }
   0xa   : > { %p1042_p6 = por %p112_p3, %p40_p0  ;;  %p119_p7 = scmp.lt.s32.totalorder %s980_s15, 5 }
   0xb   : > { %s130_s22 = sshll.u32 %s1257_s1, 4  ;;  %s982_s24 = smov [#allocation5]   ;;  %s131_s22 = int_to_ptr.hbm [resolvable:$true] %s130_s22 }
   0xc   : > { %p1050_p8 = pnand %p603_p5, %p119_p7  ;;  %s132_s25 = sshll.u32 %s982_s24, 4  ;;  %s133_s25 = int_to_ptr.vmem [resolvable:$true] %s132_s25 }
   0xd   : > { %s1059_s26 = sadd.s32 1, %s980_s15   ;;  %s983_s27 = smov 64  }
   0xe   : > { %p732_p9 = pneg %p1050_p8  ;;  %s984_s28 = smov 4  }
   0xf   : > { %s24_s29 = ssub.s32 %s980_s15, %s1059_s26  ;;  %s27_s30 = sadd.s32 1, %s976_s14 }
  0x10   : > { %p733_p10 = pnand %p732_p9, %p41_p1  ;;  %p25_p11 = scmp.eq.s32.totalorder %s24_s29, 0 }
  0x11   : > { %p34_p12 = scmp.ne.s32.totalorder %s976_s14, %s972_s13  ;;  %p35_p13 = scmp.eq.s32.totalorder %s980_s15, 0 }
  0x12   : > { %735 = dma.hbm_to_vmem [thread:$0]  (!%p733_p10), %s131_s22, 1024, %s133_s25, [#allocation6], %s983_s27, %s983_s27, %s984_s28  }
  0x13   : > { %s1071_s4 = scalar_select %p25_p11, %s976_s14, %s27_s30  }
  0x14   : > { %p1075_p0 = por %p106_p2, %p34_p12  ;;  %p745_p3 = scmp.lt.s32.totalorder %s980_s15, 4 }
  0x15   : > { %s149_s6 = sand.u32 1, %s976_s14   ;;  %s682_s7 = sshll.u32 %s980_s15, 6 }
  0x16   : > { %p36_p5 = por %p35_p13, %p34_p12  ;;  %s606_s8 = sshll.u32 %s149_s6, 6 }
  0x17   : > { %s158_s11 = scalar_lea.hbm %s1256_s0, %s682_s7  ;;  %s153_s20 = scalar_lea.vmem [#allocation2], %s606_s8 }
  0x18   : > { %s159_s17 = sshll.u32 %s158_s11, 4  ;;  %s161_s21 = sshll.u32 %s153_s20, 4  ;;  %s160_s17 = int_to_ptr.hbm [resolvable:$true] %s159_s17  ;;  %s162_s21 = int_to_ptr.vmem [resolvable:$true] %s161_s21 }
  0x19   : > { %p1085_p7 = pnand %p745_p3, %p36_p5  ;;  %s150_s24 = scalar_lea.sflag [#allocation3], %s149_s6 }
  0x1a   : > { %s880_s25 = sshra.s32 %s160_s17, 4  ;;  %s887_s8 = scalar_lea.hbm %s1256_s0, 256  ;;  %s881_s25 = int_to_ptr.hbm [resolvable:$true] %s880_s25 }
  0x1b   : > { %s882_s29 = scalar_lea.hbm %s881_s25, 64  ;;  %p884_p9 = pneg %p1085_p7 }
  0x1c   : > { %p883_p2 = scmp.ne.s32.totalorder %s881_s25, %s882_s29  ;;  %p888_p12 = scmp.lt.s32.totalorder %s881_s25, %s1256_s0 }
  0x1d   : > { %p889_p13 = scmp.lt.s32.totalorder %s887_s8, %s882_s29 }
  0x1e   : > { %p885_p10 = pnand %p884_p9, %p883_p2 }
  0x1f   : > { %p890_p3 = por %p889_p13, %p888_p12 }
  0x20   : > { %p886_p11 = pneg %p885_p10 }
  0x22   : > { %p891_p5 = pnand %p890_p3, %p886_p11 }
  0x24   : > { %894 = shalt.err (!%p891_p5)
}
  0x25   : > { %739 = dma.hbm_to_vmem [thread:$0]  (!%p1085_p7), %s160_s17, 1024, %s162_s21, %s150_s24, %s983_s27, %s983_s27, %s984_s28  }
  0x26   : > { %173 = sbr.rel (%p1050_p8) target bundleno = 269 (0x10d), region = 32  ;;  %s1105_s6 = sand.u32 (!%p1050_p8), 1, %s972_s13  }
  0x27   : > { %s610_s11 = sshll.u32 (!%p1050_p8), %s1105_s6, 6  ;;  %s176_s20 = scalar_lea.sflag (!%p1050_p8), [#allocation3], %s1105_s6 }
  0x28   : > { %s1109_s25 = scalar_lea.vmem (!%p1050_p8), [#allocation2], %s610_s11 }
  0x2b   : > { %955 = dma.done.wait (%p1037_p4), %s176_s20, 1024  }
  0x2c   : > { %957 = vsyncadd (%p1037_p4), %s176_s20, 4294966272 }
  0x2d   : > { %959 = dma.done.wait (%p41_p1), [#allocation6], 1024  }
  0x2e   : > { %961 = vsyncadd (%p41_p1), [#allocation6], 4294966272  ;;  %v698_v0 = vld [vmem:[#allocation5 + $0x38] sm:$0xff]  ;;  %v697_v1 = vld [vmem:[#allocation5 + $0x30] sm:$0xff]  ;;  %s612_s27 = sshll.u32 %s1105_s6, 7  ;;  %s699_s17 = sshll.u32 %s1028_s16, 7 }
  0x2f   : > { %342 = vmatpush.bf16.msra.mxu0 %v698_v0  ;;  %700 = vmatpush.bf16.msra.mxu1 %v698_v0  ;;  %v696_v2 = vld [vmem:[#allocation5 + $0x28] sm:$0xff]  ;;  %v695_v3 = vld [vmem:[#allocation5 + $0x20] sm:$0xff]  ;;  %v694_v4 = vld [vmem:[#allocation5 + $0x18] sm:$0xff]  ;;  %s1173_s28 = scalar_lea.vmem [#allocation7], %s612_s27  ;;  %s515_s24 = scalar_lea.hbm %s1259_s3, %s699_s17 }
  0x30   : > { %701 = vmatpush.bf16.msra.mxu2 %v698_v0  ;;  %702 = vmatpush.bf16.msra.mxu3 %v698_v0  ;;  %v693_v5 = vld [vmem:[#allocation5 + $0x10] sm:$0xff]  ;;  %v692_v6 = vld [vmem:[#allocation5 + $0x8] sm:$0xff]  ;;  %v691_v7 = vld [vmem:[#allocation5] sm:$0xff]  ;;  %s516_s29 = sshll.u32 %s1173_s28, 4  ;;  %s518_s30 = sshll.u32 %s515_s24, 4  ;;  %s517_s29 = int_to_ptr.vmem [resolvable:$true] %s516_s29  ;;  %s519_s30 = int_to_ptr.hbm [resolvable:$true] %s518_s30 }
  0x31   : > { %v683_v8 = vld [vmem:[%s1109_s25] sm:$0xff]  ;;  %v685_v9 = vld [vmem:[%s1109_s25 + $0x10] sm:$0xff]  ;;  %v684_v12 = vld [vmem:[%s1109_s25 + $0x8] sm:$0xff]  ;;  %s504_s16 = scalar_lea.sflag [#allocation4], %s1105_s6  ;;  %s924_s7 = sshra.s32 %s519_s30, 4  ;;  %s925_s7 = int_to_ptr.hbm [resolvable:$true] %s924_s7 }
  0x32   : > { %v687_v10 = vld [vmem:[%s1109_s25 + $0x20] sm:$0xff]  ;;  %v689_v11 = vld [vmem:[%s1109_s25 + $0x30] sm:$0xff]  ;;  %v686_v13 = vld [vmem:[%s1109_s25 + $0x18] sm:$0xff]  ;;  %s926_s8 = scalar_lea.hbm %s925_s7, 128  ;;  %s930_s11 = scalar_lea.hbm %s1259_s3, 512 }
  0x33   : > { %343 = vmatpush.bf16.msra.mxu0 %v697_v1  ;;  %703 = vmatpush.bf16.msra.mxu1 %v697_v1  ;;  %v688_v14 = vld [vmem:[%s1109_s25 + $0x28] sm:$0xff]  ;;  %v690_v15 = vld [vmem:[%s1109_s25 + $0x38] sm:$0xff]  ;;  %v1130_v16 = vld [vmem:[%s1258_s2] ss:$0 sm:$0xff]  ;;  %p927_p1 = scmp.ne.s32.totalorder %s925_s7, %s926_s8  ;;  %p931_p7 = scmp.lt.s32.totalorder %s925_s7, %s1259_s3 }
  0x34   : > { %704 = vmatpush.bf16.msra.mxu2 %v697_v1  ;;  %705 = vmatpush.bf16.msra.mxu3 %v697_v1  ;;  %p932_p2 = scmp.lt.s32.totalorder %s930_s11, %s926_s8 }
  0x35   : > { %p928_p4 = pnand %p927_p1, %p1075_p0 }
  0x36   : > { %p933_p9 = por %p932_p2, %p931_p7 }
  0x37   : > { %344 = vmatpush.bf16.msra.mxu0 %v696_v2  ;;  %706 = vmatpush.bf16.msra.mxu1 %v696_v2  ;;  %p929_p8 = pneg %p928_p4 }
  0x38   : > { %707 = vmatpush.bf16.msra.mxu2 %v696_v2  ;;  %708 = vmatpush.bf16.msra.mxu3 %v696_v2 }
  0x39   : > { %p934_p10 = pnand %p933_p9, %p929_p8 }
  0x3b   : > { %345 = vmatpush.bf16.msra.mxu0 %v695_v3  ;;  %709 = vmatpush.bf16.msra.mxu1 %v695_v3 }
  0x3c   : > { %710 = vmatpush.bf16.msra.mxu2 %v695_v3  ;;  %711 = vmatpush.bf16.msra.mxu3 %v695_v3 }
  0x3f   : > { %346 = vmatpush.bf16.msra.mxu0 %v694_v4  ;;  %712 = vmatpush.bf16.msra.mxu1 %v694_v4 }
  0x40   : > { %713 = vmatpush.bf16.msra.mxu2 %v694_v4  ;;  %714 = vmatpush.bf16.msra.mxu3 %v694_v4 }
  0x43   : > { %347 = vmatpush.bf16.msra.mxu0 %v693_v5  ;;  %715 = vmatpush.bf16.msra.mxu1 %v693_v5 }
  0x44   : > { %716 = vmatpush.bf16.msra.mxu2 %v693_v5  ;;  %717 = vmatpush.bf16.msra.mxu3 %v693_v5 }
  0x47   : > { %348 = vmatpush.bf16.msra.mxu0 %v692_v6  ;;  %718 = vmatpush.bf16.msra.mxu1 %v692_v6 }
  0x48   : > { %719 = vmatpush.bf16.msra.mxu2 %v692_v6  ;;  %720 = vmatpush.bf16.msra.mxu3 %v692_v6 }
  0x4b   : > { %349 = vmatpush.bf16.msra.mxu0 %v691_v7  ;;  %721 = vmatpush.bf16.msra.mxu1 %v691_v7 }
  0x4c   : > { %722 = vmatpush.bf16.msra.mxu2 %v691_v7  ;;  %723 = vmatpush.bf16.msra.mxu3 %v691_v7 }
  0x4e   : > { %350 = vmatmul.bf16.vlgmr.msra.gmra.mxu0 %v683_v8  ;;  %360 = vmatmul.bf16.vlgmr.msra.gmra.mxu1 %v685_v9 }
  0x4f   : > { %370 = vmatmul.bf16.vlgmr.msra.gmra.mxu2 %v687_v10  ;;  %380 = vmatmul.bf16.vlgmr.msra.gmra.mxu3 %v689_v11 }
  0x5e   : > { %355 = vmatmul.bf16.gmra.mxu0 %v684_v12  ;;  %365 = vmatmul.bf16.gmra.mxu1 %v686_v13 }
  0x5f   : > { %375 = vmatmul.bf16.gmra.mxu2 %v688_v14  ;;  %385 = vmatmul.bf16.gmra.mxu3 %v690_v15 }
  0xcb   : > { %v351_v17 = vpop.f32.mrf.mxu0  ;;  %v361_v18 = vpop.f32.mrf.mxu1 }
  0xcc   : > { %v352_v19 = vadd.f32 %v1130_v16, %v351_v17  ;;  %v362_v20 = vadd.f32 %v1130_v16, %v361_v18 }
  0xce   : > { %v391_v21 = vsub.f32 0.0, %v352_v19  ;;  %v395_v22 = vsub.f32 0.0, %v362_v20 }
  0xd0   : > { %v407_v23 = vmul.f32 1.442695, %v391_v21  ;;  %v415_v24 = vmul.f32 1.442695, %v395_v22 }
  0xd2   : > { %786 = vpow2.f32 %v407_v23  ;;  %v371_v25 = vpop.f32.mrf.mxu2  ;;  %v381_v26 = vpop.f32.mrf.mxu3 }
  0xd3   : > { %788 = vpow2.f32 %v415_v24  ;;  %v1135_v27 = vadd.f32 %v1130_v16, %v371_v25  ;;  %v1138_v28 = vadd.f32 %v1130_v16, %v381_v26  ;;  %v353_v29 = vpop.f32.mrf.mxu0  ;;  %v363_v30 = vpop.f32.mrf.mxu1 }
  0xd4   : > { %v1141_v31 = vadd.f32 %v1130_v16, %v353_v29  ;;  %v1144_v32 = vadd.f32 %v1130_v16, %v363_v30 }
  0xd5   : > { %v399_v33 = vsub.f32 0.0, %v1135_v27  ;;  %v403_v34 = vsub.f32 0.0, %v1138_v28 }
  0xd6   : > { %v392_v35 = vsub.f32 0.0, %v1141_v31  ;;  %v396_v36 = vsub.f32 0.0, %v1144_v32 }
  0xd7   : > { %v423_v37 = vmul.f32 1.442695, %v399_v33  ;;  %v431_v38 = vmul.f32 1.442695, %v403_v34 }
  0xd8   : > { %v787_v39 = vpop.eup %786  ;;  %v409_v42 = vmul.f32 1.442695, %v392_v35  ;;  %v417_v44 = vmul.f32 1.442695, %v396_v36 }
  0xd9   : > { %v789_v40 = vpop.eup %788  ;;  %v439_v41 = vadd.f32 1.0, %v787_v39  ;;  %790 = vpow2.f32 %v423_v37 }
  0xda   : > { %v443_v43 = vadd.f32 1.0, %v789_v40  ;;  %792 = vpow2.f32 %v431_v38  ;;  %v373_v45 = vpop.f32.mrf.mxu2  ;;  %v383_v46 = vpop.f32.mrf.mxu3 }
  0xdb   : > { %794 = vrcp.f32 %v439_v41  ;;  %v1151_v47 = vadd.f32 %v1130_v16, %v373_v45  ;;  %v1154_v48 = vadd.f32 %v1130_v16, %v383_v46  ;;  %v356_v49 = vpop.f32.mrf.mxu0  ;;  %v366_v50 = vpop.f32.mrf.mxu1 }
  0xdc   : > { %796 = vrcp.f32 %v443_v43  ;;  %v1157_v51 = vadd.f32 %v1130_v16, %v356_v49  ;;  %v1160_v52 = vadd.f32 %v1130_v16, %v366_v50 }
  0xdd   : > { %798 = vpow2.f32 %v409_v42  ;;  %v400_v53 = vsub.f32 0.0, %v1151_v47  ;;  %v404_v54 = vsub.f32 0.0, %v1154_v48 }
  0xde   : > { %800 = vpow2.f32 %v417_v44  ;;  %v393_v55 = vsub.f32 0.0, %v1157_v51  ;;  %v397_v56 = vsub.f32 0.0, %v1160_v52 }
  0xdf   : > { %v791_v57 = vpop.eup %790  ;;  %v425_v58 = vmul.f32 1.442695, %v400_v53  ;;  %v433_v61 = vmul.f32 1.442695, %v404_v54 }
  0xe0   : > { %v793_v59 = vpop.eup %792  ;;  %v447_v60 = vadd.f32 1.0, %v791_v57  ;;  %v411_v0 = vmul.f32 1.442695, %v393_v55  ;;  %v419_v3 = vmul.f32 1.442695, %v397_v56 }
  0xe1   : > { %v795_v62 = vpop.eup %794  ;;  %v451_v63 = vadd.f32 1.0, %v793_v59  ;;  %802 = vpow2.f32 %v425_v58 }
  0xe2   : > { %v797_v1 = vpop.eup %796  ;;  %v471_v2 = vmul.f32 %v795_v62, %v352_v19  ;;  %804 = vrcp.f32 %v447_v60  ;;  %v376_v4 = vpop.f32.mrf.mxu2 }
  0xe3   : > { %v386_v5 = vpop.f32.mrf.mxu3  ;;  %v799_v6 = vpop.eup %798  ;;  %v475_v7 = vmul.f32 %v797_v1, %v362_v20  ;;  %806 = vrcp.f32 %v451_v63  ;;  %v1168_v8 = vadd.f32 %v1130_v16, %v376_v4 }
  0xe4   : > { %v1171_v9 = vadd.f32 %v1130_v16, %v386_v5  ;;  %v358_v10 = vpop.f32.mrf.mxu0  ;;  %v368_v11 = vpop.f32.mrf.mxu1  ;;  %487 = vst [vmem:[%s1173_s28] sm:$0xff] %v471_v2  ;;  %v440_v13 = vadd.f32 1.0, %v799_v6  ;;  %808 = vpow2.f32 %v433_v61 }
  0xe5   : > { %v801_v12 = vpop.eup %800  ;;  %v1177_v14 = vadd.f32 %v1130_v16, %v358_v10  ;;  %v1180_v15 = vadd.f32 %v1130_v16, %v368_v11  ;;  %491 = vst [vmem:[%s1173_s28 + $0x20] sm:$0xff] %v475_v7  ;;  %810 = vpow2.f32 %v411_v0  ;;  %v401_v18 = vsub.f32 0.0, %v1168_v8 }
  0xe6   : > { %v444_v17 = vadd.f32 1.0, %v801_v12  ;;  %v405_v19 = vsub.f32 0.0, %v1171_v9  ;;  %812 = vrcp.f32 %v440_v13 }
  0xe7   : > { %v394_v20 = vsub.f32 0.0, %v1177_v14  ;;  %v398_v21 = vsub.f32 0.0, %v1180_v15  ;;  %v803_v22 = vpop.eup %802  ;;  %v427_v23 = vmul.f32 1.442695, %v401_v18 }
  0xe8   : > { %814 = vrcp.f32 %v444_v17  ;;  %v435_v24 = vmul.f32 1.442695, %v405_v19  ;;  %v805_v25 = vpop.eup %804  ;;  %v448_v26 = vadd.f32 1.0, %v803_v22 }
  0xe9   : > { %816 = vpow2.f32 %v419_v3  ;;  %v413_v29 = vmul.f32 1.442695, %v394_v20  ;;  %v807_v30 = vpop.eup %806  ;;  %v479_v33 = vmul.f32 %v805_v25, %v1135_v27  ;;  %v421_v36 = vmul.f32 1.442695, %v398_v21 }
  0xea   : > { %818 = vpow2.f32 %v427_v23  ;;  %v809_v34 = vpop.eup %808  ;;  %v483_v35 = vmul.f32 %v807_v30, %v1138_v28  ;;  %v378_v37 = vpop.f32.mrf.mxu2 }
  0xeb   : > { %820 = vrcp.f32 %v448_v26  ;;  %v388_v38 = vpop.f32.mrf.mxu3  ;;  %v811_v39 = vpop.eup %810  ;;  %495 = vst [vmem:[%s1173_s28 + $0x40] sm:$0xff] %v479_v33  ;;  %v452_v40 = vadd.f32 1.0, %v809_v34  ;;  %v1191_v41 = vadd.f32 %v1130_v16, %v378_v37 }
  0xec   : > { %822 = vpow2.f32 %v435_v24  ;;  %v1194_v42 = vadd.f32 %v1130_v16, %v388_v38  ;;  %v813_v27 = vpop.eup %812  ;;  %499 = vst [vmem:[%s1173_s28 + $0x60] sm:$0xff] %v483_v35  ;;  %v441_v43 = vadd.f32 1.0, %v811_v39 }
  0xed   : > { %824 = vpow2.f32 %v413_v29  ;;  %v472_v44 = vmul.f32 %v813_v27, %v1141_v31  ;;  %v402_v45 = vsub.f32 0.0, %v1191_v41 }
  0xee   : > { %v815_v28 = vpop.eup %814  ;;  %826 = vrcp.f32 %v452_v40  ;;  %v406_v50 = vsub.f32 0.0, %v1194_v42 }
  0xef   : > { %v817_v46 = vpop.eup %816  ;;  %v476_v49 = vmul.f32 %v815_v28, %v1144_v32  ;;  %828 = vrcp.f32 %v441_v43  ;;  %488 = vst [vmem:[%s1173_s28 + $0x8] sm:$0xff] %v472_v44  ;;  %v429_v54 = vmul.f32 1.442695, %v402_v45 }
  0xf0   : > { %v819_v53 = vpop.eup %818  ;;  %v445_v16 = vadd.f32 1.0, %v817_v46  ;;  %830 = vpow2.f32 %v421_v36  ;;  %v437_v59 = vmul.f32 1.442695, %v406_v50 }
  0xf1   : > { %v821_v55 = vpop.eup %820  ;;  %492 = vst [vmem:[%s1173_s28 + $0x28] sm:$0xff] %v476_v49  ;;  %v449_v56 = vadd.f32 1.0, %v819_v53 }
  0xf2   : > { %v823_v57 = vpop.eup %822  ;;  %v480_v31 = vmul.f32 %v821_v55, %v1151_v47  ;;  %832 = vrcp.f32 %v445_v16 }
  0xf3   : > { %v825_v58 = vpop.eup %824  ;;  %834 = vrcp.f32 %v449_v56  ;;  %v453_v32 = vadd.f32 1.0, %v823_v57 }
  0xf4   : > { %v827_v60 = vpop.eup %826  ;;  %496 = vst [vmem:[%s1173_s28 + $0x48] sm:$0xff] %v480_v31  ;;  %v442_v61 = vadd.f32 1.0, %v825_v58  ;;  %836 = vpow2.f32 %v429_v54 }
  0xf5   : > { %v829_v62 = vpop.eup %828  ;;  %v484_v63 = vmul.f32 %v827_v60, %v1154_v48  ;;  %838 = vrcp.f32 %v453_v32 }
  0xf6   : > { %v831_v0 = vpop.eup %830  ;;  %v473_v1 = vmul.f32 %v829_v62, %v1157_v51  ;;  %840 = vrcp.f32 %v442_v61 }
  0xf7   : > { %500 = vst [vmem:[%s1173_s28 + $0x68] sm:$0xff] %v484_v63  ;;  %v446_v47 = vadd.f32 1.0, %v831_v0  ;;  %842 = vpow2.f32 %v437_v59 }
  0xf8   : > { %v833_v2 = vpop.eup %832  ;;  %489 = vst [vmem:[%s1173_s28 + $0x10] sm:$0xff] %v473_v1 }
  0xf9   : > { %v835_v3 = vpop.eup %834  ;;  %v477_v4 = vmul.f32 %v833_v2, %v1160_v52  ;;  %844 = vrcp.f32 %v446_v47 }
  0xfa   : > { %v837_v48 = vpop.eup %836  ;;  %v481_v5 = vmul.f32 %v835_v3, %v1168_v8 }
  0xfb   : > { %v839_v6 = vpop.eup %838  ;;  %493 = vst [vmem:[%s1173_s28 + $0x30] sm:$0xff] %v477_v4  ;;  %v450_v51 = vadd.f32 1.0, %v837_v48 }
  0xfc   : > { %v841_v7 = vpop.eup %840  ;;  %497 = vst [vmem:[%s1173_s28 + $0x50] sm:$0xff] %v481_v5  ;;  %v485_v10 = vmul.f32 %v839_v6, %v1171_v9 }
  0xfd   : > { %v843_v11 = vpop.eup %842  ;;  %v474_v12 = vmul.f32 %v841_v7, %v1177_v14  ;;  %846 = vrcp.f32 %v450_v51 }
  0xfe   : > { %501 = vst [vmem:[%s1173_s28 + $0x70] sm:$0xff] %v485_v10  ;;  %v454_v52 = vadd.f32 1.0, %v843_v11 }
  0xff   : > { %v845_v13 = vpop.eup %844  ;;  %490 = vst [vmem:[%s1173_s28 + $0x18] sm:$0xff] %v474_v12 }
 0x100   : > { %v478_v8 = vmul.f32 %v845_v13, %v1180_v15  ;;  %848 = vrcp.f32 %v454_v52 }
 0x102   : > { %494 = vst [vmem:[%s1173_s28 + $0x38] sm:$0xff] %v478_v8 }
 0x103   : > { %v847_v9 = vpop.eup %846 }
 0x104   : > { %v482_v14 = vmul.f32 %v847_v9, %v1191_v41 }
 0x106   : > { %v849_v17 = vpop.eup %848  ;;  %498 = vst [vmem:[%s1173_s28 + $0x58] sm:$0xff] %v482_v14 }
 0x107   : > { %v486_v18 = vmul.f32 %v849_v17, %v1194_v42 }
 0x109   : > { %502 = vst [vmem:[%s1173_s28 + $0x78] sm:$0xff] %v486_v18 }
 0x10a   : > { %937 = shalt.err (!%p934_p10)
}
 0x10b   : > { %s985_s6 = smov 128   ;;  %s986_s18 = smov 8  }
 0x10c   : > { %730 = dma.vmem_to_hbm [thread:$0]  (%p1075_p0), %s517_s29, 2048, %s519_s30, %s504_s16, %s985_s6, %s985_s6, %s986_s18  }
 0x10d PF: > { %p747_p11 = scmp.ge.s32.totalorder %s980_s15, 2  ;;  %s533_s23 = sand.u32 1, %s968_s12  }
 0x10e   : > { %s534_s27 = scalar_lea.sflag [#allocation4], %s533_s23 }
 0x10f   : > { %p741_p12 = pnand %p747_p11, %p1042_p6 }
 0x111   : > { %p742_p13 = pneg %p741_p12 }
 0x113   : > { %963 = dma.done.wait (%p742_p13), %s534_s27, 2048  }
 0x114   : > { %965 = vsyncadd (%p742_p13), %s534_s27, 4294965248  ;;  %p17_p3 = scmp.ge.s32.totalorder %s1059_s26, 6   ;;  %s1265_s12 = smov %s972_s13 }
 0x115   : > { %s1266_s13 = smov %s976_s14  ;;  %s1267_s14 = smov %s1071_s4 }
 0x116   : > { %s1268_s15 = smov %s1059_s26  ;;  %19 = sbr.rel (!%p17_p3) target bundleno = 6 (0x6), region = 81 }
 0x11b   :  { %540 = vsyncpa [#allocation3], 1 }
 0x11c   :  { %542 = vsyncpa [#allocation3 + $0x1], 1 }
 0x11d   :  { %543 = vsyncpa [#allocation6], 1 }
 0x11e   :  { %544 = vsyncpa [#allocation4], 1 }
 0x11f   :  { %546 = vsyncpa [#allocation4 + $0x1], 1 }

</bundles_post_ra>
